<compile_context>
chip_gen: v7x
topology: tpu7x:2x2x1
jax: 0.10.0
libtpu: 0.0.40
codegen_flags: <defaults>
</compile_context>

<pallas_src>
import functools

import jax
import jax.numpy as jnp
from jax.experimental import pallas as pl
from jax.experimental.pallas import tpu as pltpu


def _yolo_decode_kernel(pred_ref, anchors_ref, grid_ref, out_ref, *, stride):
    """Decode TB (batch, anchor) slabs, channel-major in and out.

    pred_ref:    VMEM (TB, CC, GG)  raw logits (GG lane-dense).
    anchors_ref: VMEM (TB, 2, 1)    per-slab anchors, already * stride (pixels).
    grid_ref:    VMEM (1, 2, GG)    per-cell (gx, gy) offsets (grid-resident).
    out_ref:     VMEM (TB, CC, GG)  decoded predictions, still channel-major.
    """
    g = grid_ref[...]                          # (1, 2, GG) -> broadcasts over TB
    a = anchors_ref[...]                       # (TB, 2, 1) -> broadcasts over GG
    s = jnp.float32(stride)

    # Channels 0:2 (x, y): (grid-cell offset + sigmoid) * stride
    out_ref[:, 0:2, :] = (g + jax.nn.sigmoid(pred_ref[:, 0:2, :])) * s
    # Channels 2:4 (w, h): exp * (anchor * stride)   (anchor pre-scaled on host)
    out_ref[:, 2:4, :] = jnp.exp(pred_ref[:, 2:4, :]) * a
    # Channels 4:  (objectness + classes): sigmoid, no stride
    out_ref[:, 4:, :] = jax.nn.sigmoid(pred_ref[:, 4:, :])


def _pick_tb(n_slabs, slab_bytes, *, vmem_budget=24 * 1024 * 1024):
    """Largest divisor of n_slabs fitting a 4-buffer VMEM budget, with >= 2 blocks.

    4 block-sized buffers: pred (double-buffered) + out (double-buffered).
    The n_blocks >= 2 cap keeps both v7x TensorCores busy on the "parallel"
    grid axis; it is harmless on v5e/v6e (1 TC).
    """
    cap = max(1, vmem_budget // (4 * slab_bytes))
    if n_slabs >= 2:
        cap = min(cap, n_slabs // 2)
    cap = min(cap, n_slabs)
    tb = 1
    for d in range(1, cap + 1):
        if n_slabs % d == 0:
            tb = d
    return tb


def yolo_detection_forward(x, anchors, img_size, num_class):
    """Equivalent of YoloDetection.forward(x, targets)[0] (the `output` tensor).

    x: (B, A*(5+C), G, G) float32 (NCHW, as in PyTorch).
    Returns: (B, A*G*G, 5+C) float32.
    """
    B = x.shape[0]
    A = len(anchors)
    G = x.shape[2]
    CC = num_class + 5
    GG = G * G
    assert x.shape[1] == A * CC and x.shape[3] == G

    stride = img_size / G

    # Channel-major view: pure reshape, no data movement.
    pred_cm = x.reshape(B * A, CC, GG)

    # Per-slab anchors pre-multiplied by stride:
    #   exp(w) * (anchor_w / stride) * stride == exp(w) * anchor_w  (pixels).
    ga = jnp.asarray(anchors, dtype=jnp.float32)              # (A, 2) in pixels
    anchors_pslab = jnp.tile(ga, (B, 1)).reshape(B * A, 2, 1)  # slab = b*A + a

    # Precomputed grid-cell offsets: (1, 2, GG) with row0 = gx, row1 = gy.
    r = jnp.arange(GG, dtype=jnp.int32)
    grid_off = jnp.stack(
        [(r % G).astype(jnp.float32), (r // G).astype(jnp.float32)],
        axis=0,
    ).reshape(1, 2, GG)

    slab_bytes = CC * GG * 4
    TB = _pick_tb(B * A, slab_bytes)
    n_blocks = (B * A) // TB

    kernel = functools.partial(_yolo_decode_kernel, stride=float(stride))

    n_elem = B * A * GG * CC
    cost = pl.CostEstimate(
        flops=4 * n_elem,
        transcendentals=n_elem,
        bytes_accessed=2 * n_elem * 4,
    )

    out_cm = pl.pallas_call(
        kernel,
        out_shape=jax.ShapeDtypeStruct((B * A, CC, GG), jnp.float32),
        grid_spec=pltpu.PrefetchScalarGridSpec(
            num_scalar_prefetch=0,
            grid=(n_blocks,),
            in_specs=[
                pl.BlockSpec((TB, CC, GG), lambda i: (i, 0, 0)),
                pl.BlockSpec((TB, 2, 1), lambda i: (i, 0, 0)),
                pl.BlockSpec((1, 2, GG), lambda i: (0, 0, 0)),
            ],
            out_specs=pl.BlockSpec((TB, CC, GG), lambda i: (i, 0, 0)),
        ),
        compiler_params=pltpu.CompilerParams(
            dimension_semantics=("parallel",),
            vmem_limit_bytes=48 * 1024 * 1024,
        ),
        cost_estimate=cost,
    )(pred_cm, anchors_pslab, grid_off)

    # Single clean HBM transpose pass to the torch layout: (B*A, CC, GG) ->
    # (B*A, GG, CC) -> (B, A*G*G, 5+C).
    out = jnp.swapaxes(out_cm, 1, 2).reshape(B, A * GG, CC)
    return out


def _reference(x, anchors, img_size, num_class):
    """Pure-JAX reference mirroring the torch forward (output tensor only)."""
    B = x.shape[0]
    A = len(anchors)
    G = x.shape[2]
    CC = num_class + 5
    stride = img_size / G

    pred = x.reshape(B, A, CC, G, G).transpose(0, 1, 3, 4, 2)    # (B, A, G, G, CC)
    bx = jax.nn.sigmoid(pred[..., 0])
    by = jax.nn.sigmoid(pred[..., 1])
    w = pred[..., 2]
    h = pred[..., 3]
    conf = jax.nn.sigmoid(pred[..., 4])
    cls = jax.nn.sigmoid(pred[..., 5:])

    left_x = jnp.tile(jnp.arange(G, dtype=jnp.float32), (G, 1)).reshape(1, 1, G, G)
    left_y = jnp.tile(jnp.arange(G, dtype=jnp.float32), (G, 1)).T.reshape(1, 1, G, G)
    ga = jnp.asarray([(aw / stride, ah / stride) for aw, ah in anchors],
                     dtype=jnp.float32)
    aw = ga[:, 0].reshape(1, A, 1, 1)
    ah = ga[:, 1].reshape(1, A, 1, 1)

    bbox = jnp.stack([left_x + bx, left_y + by, jnp.exp(w) * aw, jnp.exp(h) * ah],
                     axis=-1)
    out = jnp.concatenate(
        [bbox.reshape(B, -1, 4) * stride,
         conf.reshape(B, -1, 1),
         cls.reshape(B, -1, num_class)], axis=-1)
    return out


if __name__ == "__main__":
    # Small deterministic config consistent with the module.
    anchors = [(10.0, 13.0), (33.0, 23.0)]       # A = 2
    img_size = 64
    num_class = 3                                # 5 + C = 8 channels per anchor
    B, G = 2, 8

    key = jax.random.PRNGKey(0)
    x = jax.random.normal(
        key, (B, len(anchors) * (num_class + 5), G, G), dtype=jnp.float32
    )

    out = yolo_detection_forward(x, anchors, img_size, num_class)
    out = jax.block_until_ready(out)

    ref = _reference(x, anchors, img_size, num_class)
    assert out.shape == (B, len(anchors) * G * G, num_class + 5)
    assert jnp.allclose(out, ref, atol=1e-5, rtol=1e-5)

    print("KERNEL_OK")
</pallas_src>

<mosaic_0001>
module attributes {stable_mosaic.version = 11 : i64} {
  func.func @_yolo_decode_kernel(%arg0: i32, %arg1: memref<2x8x64xf32, #tpu.memory_space<vmem>>, %arg2: memref<2x2x1xf32, #tpu.memory_space<vmem>>, %arg3: memref<1x2x64xf32, #tpu.memory_space<vmem>>, %arg4: memref<2x8x64xf32, #tpu.memory_space<vmem>>) attributes {dimension_semantics = [#tpu.dimension_semantics<parallel>], iteration_bounds = array<i64: 2>, scalar_prefetch = 0 : i64, scratch_operands = 0 : i64, tpu.core_type = #tpu.core_type<tc>, window_params = [{transform_indices = @transform_0, window_bounds = array<i64: 2, 8, 64>}, {transform_indices = @transform_1, window_bounds = array<i64: 2, 2, 1>}, {pipeline_mode = #tpu.pipeline_mode<synchronous>, transform_indices = @transform_2, window_bounds = array<i64: 1, 2, 64>}, {transform_indices = @transform_3, window_bounds = array<i64: 2, 8, 64>}]} {
    %c0 = arith.constant 0 : index
    %c0_0 = arith.constant 0 : index
    %c0_1 = arith.constant 0 : index
    %0 = vector.load %arg3[%c0, %c0_0, %c0_1] : memref<1x2x64xf32, #tpu.memory_space<vmem>>, vector<1x2x64xf32>
    %c0_2 = arith.constant 0 : index
    %c0_3 = arith.constant 0 : index
    %c0_4 = arith.constant 0 : index
    %1 = vector.load %arg2[%c0_2, %c0_3, %c0_4] : memref<2x2x1xf32, #tpu.memory_space<vmem>>, vector<2x2x1xf32>
    %c0_5 = arith.constant 0 : index
    %c0_6 = arith.constant 0 : index
    %c0_7 = arith.constant 0 : index
    %2 = vector.load %arg1[%c0_5, %c0_6, %c0_7] : memref<2x8x64xf32, #tpu.memory_space<vmem>>, vector<2x2x64xf32>
    %3 = arith.negf %2 : vector<2x2x64xf32>
    %4 = math.exp %3 : vector<2x2x64xf32>
    %cst = arith.constant 1.000000e+00 : f32
    %5 = vector.broadcast %cst : f32 to vector<2x2x64xf32>
    %6 = arith.addf %5, %4 : vector<2x2x64xf32>
    %7 = arith.divf %5, %6 : vector<2x2x64xf32>
    %8 = vector.broadcast %0 : vector<1x2x64xf32> to vector<2x2x64xf32>
    %9 = arith.addf %8, %7 : vector<2x2x64xf32>
    %cst_8 = arith.constant 8.000000e+00 : f32
    %10 = vector.broadcast %cst_8 : f32 to vector<2x2x64xf32>
    %11 = arith.mulf %9, %10 : vector<2x2x64xf32>
    %c0_9 = arith.constant 0 : index
    %c0_10 = arith.constant 0 : index
    %c0_11 = arith.constant 0 : index
    %12 = vector.load %arg4[%c0_9, %c0_10, %c0_11] : memref<2x8x64xf32, #tpu.memory_space<vmem>>, vector<2x2x64xf32>
    tpu.vector_store %arg4[%c0_9, %c0_10, %c0_11], %11 {strides = array<i32>} : memref<2x8x64xf32, #tpu.memory_space<vmem>>, vector<2x2x64xf32>,
    %c0_12 = arith.constant 0 : index
    %c2 = arith.constant 2 : index
    %c0_13 = arith.constant 0 : index
    %13 = vector.load %arg1[%c0_12, %c2, %c0_13] : memref<2x8x64xf32, #tpu.memory_space<vmem>>, vector<2x2x64xf32>
    %14 = math.exp %13 : vector<2x2x64xf32>
    %15 = vector.broadcast %1 : vector<2x2x1xf32> to vector<2x2x64xf32>
    %16 = arith.mulf %14, %15 : vector<2x2x64xf32>
    %c0_14 = arith.constant 0 : index
    %c2_15 = arith.constant 2 : index
    %c0_16 = arith.constant 0 : index
    %17 = vector.load %arg4[%c0_14, %c2_15, %c0_16] : memref<2x8x64xf32, #tpu.memory_space<vmem>>, vector<2x2x64xf32>
    tpu.vector_store %arg4[%c0_14, %c2_15, %c0_16], %16 {strides = array<i32>} : memref<2x8x64xf32, #tpu.memory_space<vmem>>, vector<2x2x64xf32>,
    %c0_17 = arith.constant 0 : index
    %c4 = arith.constant 4 : index
    %c0_18 = arith.constant 0 : index
    %18 = vector.load %arg1[%c0_17, %c4, %c0_18] : memref<2x8x64xf32, #tpu.memory_space<vmem>>, vector<2x4x64xf32>
    %19 = arith.negf %18 : vector<2x4x64xf32>
    %20 = math.exp %19 : vector<2x4x64xf32>
    %cst_19 = arith.constant 1.000000e+00 : f32
    %21 = vector.broadcast %cst_19 : f32 to vector<2x4x64xf32>
    %22 = arith.addf %21, %20 : vector<2x4x64xf32>
    %23 = arith.divf %21, %22 : vector<2x4x64xf32>
    %c0_20 = arith.constant 0 : index
    %c4_21 = arith.constant 4 : index
    %c0_22 = arith.constant 0 : index
    %24 = vector.load %arg4[%c0_20, %c4_21, %c0_22] : memref<2x8x64xf32, #tpu.memory_space<vmem>>, vector<2x4x64xf32>
    tpu.vector_store %arg4[%c0_20, %c4_21, %c0_22], %23 {strides = array<i32>} : memref<2x8x64xf32, #tpu.memory_space<vmem>>, vector<2x4x64xf32>,
    return
  }
  func.func @transform_0(%arg0: i32) -> (i32, i32, i32) {
    %c0_i32 = arith.constant 0 : i32
    %c0_i32_0 = arith.constant 0 : i32
    %c0_i32_1 = arith.constant 0 : i32
    return %arg0, %c0_i32, %c0_i32_0 : i32, i32, i32
  }
  func.func @transform_1(%arg0: i32) -> (i32, i32, i32) {
    %c0_i32 = arith.constant 0 : i32
    %c0_i32_0 = arith.constant 0 : i32
    %c0_i32_1 = arith.constant 0 : i32
    return %arg0, %c0_i32, %c0_i32_0 : i32, i32, i32
  }
  func.func @transform_2(%arg0: i32) -> (i32, i32, i32) {
    %c0_i32 = arith.constant 0 : i32
    %c0_i32_0 = arith.constant 0 : i32
    %c0_i32_1 = arith.constant 0 : i32
    %c0_i32_2 = arith.constant 0 : i32
    return %c0_i32, %c0_i32_0, %c0_i32_1 : i32, i32, i32
  }
  func.func @transform_3(%arg0: i32) -> (i32, i32, i32) {
    %c0_i32 = arith.constant 0 : i32
    %c0_i32_0 = arith.constant 0 : i32
    %c0_i32_1 = arith.constant 0 : i32
    return %arg0, %c0_i32, %c0_i32_0 : i32, i32, i32
  }
}

</mosaic_0001>

<bundles_post_ra>
// kernel: tpu_custom_call.1
= control target key start
LH: loop header
LB: loop body
LE: loop exit
PB: predicated region body
PF: predicated region fallthrough
CT: control target
= control target key end

     0   :  { %8 = vsyncpa [#allocation3], 0  ;;  %s777_s0 = inlined_call_operand.hbm [shape: f32[4,8,64], index: 0, kind: input, shape index: {}]   ;;  %s778_s1 = inlined_call_operand.vmem [shape: f32[4,2,1], index: 1, kind: input, shape index: {}]   ;;  %s779_s2 = inlined_call_operand.vmem [shape: f32[1,2,64], index: 2, kind: input, shape index: {}]   ;;  %s780_s3 = inlined_call_operand.hbm [shape: f32[4,8,64], index: 3, kind: output, shape index: {}]  }
   0x1   :  { %10 = vsyncpa [#allocation3 + $0x1], 0 }
   0x2   :  { %11 = vsyncpa [#allocation4], 0 }
   0x3   :  { %13 = vsyncpa [#allocation4 + $0x1], 0  ;;  %s592_s12 = smov 0   ;;  %s594_s13 = smov 0  }
   0x4   :  { %s596_s14 = smov 0   ;;  %s598_s15 = smov 0  }
   0x5 LB: > { %s613_s16 = sadd.s32 4294967295, %s563_s15   ;;  %s373_s17 = sadd.s32 4294967294, %s563_s15   ;;  %s563_s15 = sphi %s598_s15, %s793_s15   ;;  %s559_s14 = sphi %s596_s14, %s792_s14   ;;  %s555_s13 = sphi %s594_s13, %s791_s13   ;;  %s551_s12 = sphi %s592_s12, %s790_s12  }
   0x6   : > { %s617_s18 = sadd.s32 1, %s563_s15   ;;  %s26_s19 = sadd.s32 1, %s559_s14 }
   0x7   : > { %s23_s20 = ssub.s32 %s563_s15, %s617_s18  ;;  %p33_p0 = scmp.ne.s32.totalorder %s559_s14, %s555_s13 }
   0x8   : > { %p24_p1 = scmp.eq.s32.totalorder %s23_s20, 0  ;;  %p34_p2 = scmp.eq.s32.totalorder %s563_s15, 0 }
   0x9   : > { %p39_p3 = scmp.ne.s32.totalorder %s555_s13, %s551_s12  ;;  %p40_p4 = scmp.eq.s32.totalorder %s613_s16, 0 }
   0xa   : > { %s629_s21 = scalar_select %p24_p1, %s559_s14, %s26_s19  }
   0xb   : > { %p631_p5 = por %p34_p2, %p33_p0  ;;  %p635_p6 = por %p40_p4, %p39_p3 }
   0xc   : > { %p110_p7 = scmp.eq.s32.totalorder %s613_s16, 1  ;;  %p116_p8 = scmp.eq.s32.totalorder %s373_s17, 1 }
   0xd   : > { %p407_p10 = scmp.lt.s32.totalorder %s563_s15, 2  ;;  %s139_s26 = sand.u32 1, %s559_s14  }
   0xe   : > { %p642_p11 = por %p110_p7, %p33_p0  ;;  %p646_p12 = por %p116_p8, %p39_p3 }
   0xf   : > { %s393_s27 = sshll.u32 %s563_s15, 8  ;;  %s376_s28 = sshll.u32 %s139_s26, 4 }
  0x10   : > { %s784_s24 = scalar_select %p642_p11, 1, 0 }
  0x11   : > { %s785_s25 = scalar_select %p646_p12, 1, 0 }
  0x12   : > { %s655_s4 = scalar_lea.hbm %s777_s0, %s393_s27  ;;  %s143_s5 = scalar_lea.vmem [#allocation2], %s376_s28 }
  0x13   : > { %s150_s6 = sshll.u32 %s143_s5, 4  ;;  %p659_p13 = pnand %p407_p10, %p631_p5  ;;  %s663_s6 = int_to_ptr.vmem [resolvable:$true] %s150_s6 }
  0x14   : > { %s665_s8 = scalar_lea.sflag [#allocation3], %s139_s26  ;;  %s467_s9 = scalar_lea.hbm %s655_s4, 256 }
  0x15   : > { %p468_p0 = scmp.ne.s32.totalorder %s655_s4, %s467_s9  ;;  %p469_p1 = pneg %p659_p13 }
  0x16   : > { %s472_s17 = scalar_lea.hbm %s777_s0, 512  ;;  %p473_p4 = scmp.lt.u32.totalorder %s655_s4, %s777_s0 }
  0x17   : > { %p470_p2 = pnand %p469_p1, %p468_p0  ;;  %p474_p5 = scmp.lt.u32.totalorder %s472_s17, %s467_s9 }
  0x18   : > { %p476_p8 = scmp.lt.u32.totalorder %s467_s9, %s655_s4 }
  0x19   : > { %p471_p3 = pneg %p470_p2  ;;  %p475_p7 = por %p474_p5, %p473_p4 }
  0x1b   : > { %p477_p10 = por %p476_p8, %p475_p7 }
  0x1d   : > { %p478_p9 = pnand %p477_p10, %p471_p3 }
  0x1f   : > { %481 = shalt.err (!%p478_p9)
}
  0x20   : > { %s482_s22 = scalar_lea.vmem %s663_s6, 256  ;;  %s565_s26 = smov [#allocation2]  }
  0x21   : > { %p483_p0 = scmp.ne.s32.totalorder %s663_s6, %s482_s22  ;;  %s487_s27 = sshll.u32 %s565_s26, 4  ;;  %s488_s27 = int_to_ptr.vmem [resolvable:$false] %s487_s27 }
  0x22   : > { %s489_s28 = scalar_lea.vmem %s488_s27, 512  ;;  %p490_p11 = scmp.lt.s32.totalorder %s663_s6, %s488_s27 }
  0x23   : > { %p485_p2 = pnand %p483_p0, %p469_p1  ;;  %p491_p4 = scmp.lt.s32.totalorder %s489_s28, %s482_s22 }
  0x25   : > { %p486_p12 = pneg %p485_p2  ;;  %p492_p5 = por %p491_p4, %p490_p11 }
  0x27   : > { %p493_p7 = pnand %p492_p5, %p486_p12 }
  0x29   : > { %496 = shalt.err (!%p493_p7)
}
  0x2a   : > { %s566_s29 = smov 128   ;;  %s567_s30 = smov 8  }
  0x2b   : > { %402 = dma.hbm_to_vmem [thread:$0]  (!%p659_p13), %s655_s4, 256, %s663_s6, %s665_s8, %s566_s29, %s566_s29, %s567_s30  }
  0x2c   : > { %p379_p9 = scmp.ge.s32.totalorder %s563_s15, 1  ;;  %p167_p1 = scmp.lt.s32.totalorder %s563_s15, 3 }
  0x2e   : > { %p168_p3 = pnand %p379_p9, %p167_p1 }
  0x2f   : > { %s696_s5 = sand.u32 (!%p168_p3), 1, %s555_s13  }
  0x30   : > { %171 = sbr.rel (%p168_p3) target bundleno = 212 (0xd4), region = 32  ;;  %s380_s9 = sshll.u32 (!%p168_p3), %s696_s5, 4 }
  0x31   : > { %s174_s10 = scalar_lea.sflag (!%p168_p3), [#allocation3], %s696_s5  ;;  %s702_s11 = scalar_lea.vmem (!%p168_p3), [#allocation2], %s380_s9 }
  0x37   : > { %542 = dma.done.wait (%p635_p6), %s174_s10, 256  }
  0x38   : > { %544 = vsyncadd (%p635_p6), %s174_s10, 4294967040  ;;  %s382_s4 = sshll.u32 %s613_s16, 1  ;;  %v568_v0 = vmov 0   ;;  %v216_v2 = vld [vmem:[%s702_s11] sm:$0x3]  ;;  %vm271_vm0 = vcmask 519168  }
  0x39   : > { %446 = vset.pattern.permute.xlu0 %v568_v0  ;;  %p207_p11 = scmp.lt.s32.totalorder %s382_s4, 3  ;;  %v217_v3 = vld [vmem:[%s702_s11 + $0x8] sm:$0x3]  ;;  %v384_v4 = vmul.f32 -1.442695, %v216_v2  ;;  %vm234_vm1 = vcmask 517120  }
  0x3a   : > { %v385_v6 = vmul.f32 -1.442695, %v217_v3  ;;  %v257_v7 = vld [vmem:[%s702_s11 + $0x4] sm:$0xf]  ;;  %v258_v8 = vld [vmem:[%s702_s11 + $0xc] sm:$0xf] }
  0x3b   : > { %s795_s4 = smov (!%p207_p11, %s382_s4), 3  ;;  %447 = vpow2.f32 %v384_v4  ;;  %v386_v9 = vmul.f32 -1.442695, %v257_v7  ;;  %v387_v10 = vmul.f32 -1.442695, %v258_v8  ;;  %s204_s20 = scalar_lea.vmem [#allocation5], %s380_s9 }
  0x3c   : > { %s383_s6 = sshll.u32 %s795_s4, 1  ;;  %449 = vpow2.f32 %v385_v6  ;;  %v213_v19 = vld [vmem:[%s779_s2] sm:$0x3]  ;;  %v237_v28 = vld [vmem:[%s702_s11 + $0x2] sm:$0x3]  ;;  %s288_s22 = sshll.u32 %s204_s20, 4  ;;  %s726_s22 = int_to_ptr.vmem [resolvable:$true] %s288_s22 }
  0x3d   : > { %s210_s17 = scalar_lea.vmem %s778_s1, %s383_s6  ;;  %451 = vpow2.f32 %v386_v9  ;;  %v239_v29 = vmul.f32 1.442695, %v237_v28  ;;  %v238_v30 = vld [vmem:[%s702_s11 + $0xa] sm:$0x3]  ;;  %s394_s26 = sshll.u32 %s613_s16, 8 }
  0x3e   : > { %v214_v1 = vld [vmem:[%s210_s17] sm:$0x3]  ;;  %v215_v5 = vld [vmem:[%s210_s17 + $0x2] sm:$0x3]  ;;  %453 = vpow2.f32 %v387_v10  ;;  %v241_v31 = vmul.f32 1.442695, %v238_v30  ;;  %s732_s29 = scalar_lea.hbm %s780_s3, %s394_s26 }
  0x3f   : > { %245 = vperm.xlu0 %446, %v214_v1   ;;  %s275_s30 = scalar_lea.sflag [#allocation4], %s696_s5  ;;  %s497_s9 = scalar_lea.vmem %s726_s22, 256 }
  0x40   : > { %p498_p6 = scmp.ne.s32.totalorder %s726_s22, %s497_s9  ;;  %p787_p12 = scmp.ne.s32.totalorder %s784_s24, 0 }
  0x41   : > { %s569_s16 = smov [#allocation5]  }
  0x42   : > { %p499_p13 = pnand %p498_p6, %p787_p12  ;;  %s501_s10 = sshll.u32 %s569_s16, 4  ;;  %s502_s10 = int_to_ptr.vmem [resolvable:$false] %s501_s10 }
  0x43   : > { %250 = vperm.xlu0 %446, %v215_v5   ;;  %s503_s11 = scalar_lea.vmem %s502_s10, 512  ;;  %p504_p10 = scmp.lt.s32.totalorder %s726_s22, %s502_s10 }
  0x44   : > { %p500_p8 = pneg %p499_p13  ;;  %p505_p0 = scmp.lt.s32.totalorder %s503_s11, %s497_s9 }
  0x45   : > { %v448_v11 = vpop.eup %447 }
  0x46   : > { %v450_v12 = vpop.eup %449  ;;  %v224_v13 = vadd.f32 1.0, %v448_v11  ;;  %p506_p2 = por %p505_p0, %p504_p10 }
  0x47   : > { %v225_v14 = vadd.f32 1.0, %v450_v12  ;;  %v452_v15 = vpop.eup %451 }
  0x48   : > { %455 = vrcp.f32 %v224_v13  ;;  %v454_v16 = vpop.eup %453  ;;  %v265_v17 = vadd.f32 1.0, %v452_v15  ;;  %p507_p4 = pnand %p506_p2, %p500_p8 }
  0x49   : > { %457 = vrcp.f32 %v225_v14  ;;  %v266_v18 = vadd.f32 1.0, %v454_v16 }
  0x4a   : > { %459 = vrcp.f32 %v265_v17 }
  0x4b   : > { %461 = vrcp.f32 %v266_v18 }
  0x4c   : > { %463 = vpow2.f32 %v239_v29 }
  0x4d   : > { %465 = vpow2.f32 %v241_v31 }
  0x52   : > { %v456_v20 = vpop.eup %455 }
  0x53   : > { %v458_v21 = vpop.eup %457  ;;  %v230_v22 = vadd.f32 %v456_v20, %v213_v19 }
  0x54   : > { %v231_v23 = vadd.f32 %v458_v21, %v213_v19  ;;  %v460_v24 = vpop.eup %459 }
  0x55   : > { %v232_v25 = vmul.f32 8.0, %v230_v22  ;;  %v462_v26 = vpop.eup %461  ;;  %272 = vst.msk [vmem:[%s204_s20 + $0x4] sm:$0xf] %vm271_vm0, %v460_v24 }
  0x56   : > { %v233_v27 = vmul.f32 8.0, %v231_v23  ;;  %273 = vst.msk [vmem:[%s204_s20 + $0xc] sm:$0xf] %vm271_vm0, %v462_v26  ;;  %v464_v32 = vpop.eup %463 }
  0x57   : > { %235 = vst.msk [vmem:[%s204_s20] sm:$0x3] %vm234_vm1, %v232_v25  ;;  %v466_v35 = vpop.eup %465 }
  0x58   : > { %236 = vst.msk [vmem:[%s204_s20 + $0x8] sm:$0x3] %vm234_vm1, %v233_v27 }
  0xbe   : > { %v246_v33 = vpop.permute.xlu0 %245 }
  0xbf   : > { %v253_v34 = vmul.f32 %v464_v32, %v246_v33 }
  0xc1   : > { %255 = vst.msk [vmem:[%s204_s20 + $0x2] sm:$0x3] %vm234_vm1, %v253_v34 }
  0xc2   : > { %v251_v36 = vpop.permute.xlu0 %250 }
  0xc3   : > { %v254_v37 = vmul.f32 %v466_v35, %v251_v36 }
  0xc5   : > { %256 = vst.msk [vmem:[%s204_s20 + $0xa] sm:$0x3] %vm234_vm1, %v254_v37 }
  0xc6   : > { %510 = shalt.err (!%p507_p4)
}
  0xc7   : > { %s511_s4 = scalar_lea.hbm %s732_s29, 256  ;;  %s515_s8 = scalar_lea.hbm %s780_s3, 512 }
  0xc8   : > { %p512_p5 = scmp.ne.s32.totalorder %s732_s29, %s511_s4  ;;  %p516_p1 = scmp.lt.u32.totalorder %s732_s29, %s780_s3 }
  0xc9   : > { %p517_p3 = scmp.lt.u32.totalorder %s515_s8, %s511_s4  ;;  %p519_p6 = scmp.lt.u32.totalorder %s511_s4, %s732_s29 }
  0xca   : > { %p513_p7 = pnand %p512_p5, %p787_p12 }
  0xcb   : > { %p518_p11 = por %p517_p3, %p516_p1 }
  0xcc   : > { %p514_p9 = pneg %p513_p7 }
  0xcd   : > { %p520_p13 = por %p519_p6, %p518_p11 }
  0xcf   : > { %p521_p8 = pnand %p520_p13, %p514_p9 }
  0xd1   : > { %524 = shalt.err (!%p521_p8)
}
  0xd2   : > { %s570_s19 = smov 128   ;;  %s571_s20 = smov 8  }
  0xd3   : > { %397 = dma.vmem_to_hbm [thread:$0]  (%p787_p12), %s726_s22, 256, %s732_s29, %s275_s30, %s570_s19, %s570_s19, %s571_s20  }
  0xd4 PF: > { %s303_s26 = sand.u32 1, %s551_s12   ;;  %p788_p10 = scmp.ne.s32.totalorder %s785_s25, 0 }
  0xd5   : > { %p789_p0 = scmp.ge.s32.totalorder %s563_s15, 2  ;;  %s304_s27 = scalar_lea.sflag [#allocation4], %s303_s26 }
  0xd7   : > { %p404_p2 = pnand %p789_p0, %p788_p10 }
  0xd9   : > { %546 = dma.done.wait (!%p404_p2), %s304_s27, 256  }
  0xda   : > { %548 = vsyncadd (!%p404_p2), %s304_s27, 4294967040  ;;  %p16_p4 = scmp.ge.s32.totalorder %s617_s18, 4   ;;  %s790_s12 = smov %s555_s13 }
  0xdb   : > { %s791_s13 = smov %s559_s14  ;;  %s792_s14 = smov %s629_s21 }
  0xdc   : > { %s793_s15 = smov %s617_s18  ;;  %18 = sbr.rel (!%p16_p4) target bundleno = 5 (0x5), region = 80 }
  0xe3   :  { %309 = vsyncpa [#allocation3], 1 }
  0xe4   :  { %311 = vsyncpa [#allocation3 + $0x1], 1 }
  0xe5   :  { %312 = vsyncpa [#allocation4], 1 }
  0xe6   :  { %314 = vsyncpa [#allocation4 + $0x1], 1 }

</bundles_post_ra>
